<compile_context>
chip_gen: v7x
topology: tpu7x:2x2x1
jax: 0.10.0
libtpu: 0.0.40
codegen_flags: <defaults>
</compile_context>

<pallas_src>
import jax
import jax.numpy as jnp
from jax.experimental import pallas as pl
from jax.experimental.pallas import tpu as pltpu


def ea_kernel(x_ref, w0_ref, b0_ref, w_ref, shift_ref, o_ref,
              lacc_ref, m_ref, l_ref):
    """Grid = (batch, phase, n_tile).

    x_ref     : (1, C, NT)  input tile (compute dtype)
    w0_ref    : (K, C)      folded W0 @ W1 (compute dtype)
    b0_ref    : (K, 1)      folded W0 @ b1 (f32)
    w_ref     : (C, K)      folded diag(bn_scale) @ W3 @ W2 (compute dtype)
    shift_ref : (C, 1)      folded BN shift (f32)
    o_ref     : (1, C, NT)  output tile (f32)
    lacc_ref  : (n_tiles, K, NT) f32 scratch holding attn logits per tile
    m_ref     : (K, 1) f32 running row max, l_ref : (K, 1) f32 running row sum
    """
    ph = pl.program_id(1)
    j = pl.program_id(2)

    @pl.when((ph == 0) & (j == 0))
    def _():
        m_ref[...] = jnp.full_like(m_ref, -jnp.inf)
        l_ref[...] = jnp.zeros_like(l_ref)

    # ---- phase 0: logits + online softmax statistics over the pixel axis ----
    @pl.when(ph == 0)
    def _():
        x = x_ref[0]                                              # (C, NT)
        logits = jnp.dot(w0_ref[...], x,
                         preferred_element_type=jnp.float32) + b0_ref[...]
        lacc_ref[j] = logits                                      # (K, NT)

        m_old = m_ref[...]                                        # (K, 1)
        m_new = jnp.maximum(m_old, jnp.max(logits, axis=-1, keepdims=True))
        l_ref[...] = (l_ref[...] * jnp.exp(m_old - m_new)
                      + jnp.sum(jnp.exp(logits - m_new), axis=-1, keepdims=True))
        m_ref[...] = m_new

    # ---- phase 1: finish softmax, double-normalize, output matmul ----------
    @pl.when(ph == 1)
    def _():
        logits = lacc_ref[j]                                      # (K, NT)
        p = jnp.exp(logits - m_ref[...])
        # softmax over pixels: multiply by reciprocal of row sum (EUP, not VALU)
        sm = p * pl.reciprocal(l_ref[...], approx=True)
        # double normalization: divide by sum over K (sublane reduction)
        col = jnp.sum(sm, axis=0, keepdims=True)                  # (1, NT)
        attn = sm * pl.reciprocal(1e-9 + col, approx=True)

        u = jnp.dot(w_ref[...], attn.astype(w_ref.dtype),
                    preferred_element_type=jnp.float32) + shift_ref[...]
        o_ref[0] = jnp.maximum(u + x_ref[0].astype(jnp.float32), 0.0)


def external_attention(x_nchw, params, *, compute_dtype=jnp.float32,
                       n_tile=None):
    """x_nchw: (B, C, H, W) float32. Returns f32 (B, C, H, W)."""
    b, c, h, w = x_nchw.shape
    n = h * w
    k = c // 4

    w1, b1, w0, w2, w3, gamma, beta, rmean, rvar = params
    eps = 1e-5
    hp = jax.lax.Precision.HIGHEST

    # Fold conv1 into linear_0:  W0 @ (W1 @ x + b1) = (W0 @ W1) @ x + W0 @ b1
    w0_eff = jnp.dot(w0, w1, precision=hp)                        # (K, C)
    b0_eff = jnp.dot(w0, b1, precision=hp).reshape(k, 1)          # (K, 1)
    # Fold linear_1 + conv2 + eval-mode BN into one (C, K) matmul + shift.
    scale = gamma / jnp.sqrt(rvar + eps)                          # (C,)
    shift = (beta - rmean * scale).reshape(c, 1)                  # (C, 1)
    w_eff = scale[:, None] * jnp.dot(w3, w2, precision=hp)        # (C, K)

    # Pixel-axis tiling (multiple of 128 lanes when possible).
    if n_tile is None or n % n_tile != 0:
        n_tile = next((t for t in (512, 256, 128) if n % t == 0), n)
    n_tiles = n // n_tile

    x = x_nchw.reshape(b, c, n).astype(compute_dtype)
    w0_eff = w0_eff.astype(compute_dtype)
    w_eff = w_eff.astype(compute_dtype)

    wmap = lambda bi, ph, j: (0, 0)       # weights: constant block -> DMA'd once
    xmap = lambda bi, ph, j: (bi, 0, j)   # x / out streamed per (batch, tile)

    out = pl.pallas_call(
        ea_kernel,
        out_shape=jax.ShapeDtypeStruct((b, c, n), jnp.float32),
        grid_spec=pltpu.PrefetchScalarGridSpec(
            num_scalar_prefetch=0,
            grid=(b, 2, n_tiles),
            in_specs=[
                pl.BlockSpec((1, c, n_tile), xmap),   # x
                pl.BlockSpec((k, c), wmap),           # W0_eff
                pl.BlockSpec((k, 1), wmap),           # b0_eff
                pl.BlockSpec((c, k), wmap),           # W_eff
                pl.BlockSpec((c, 1), wmap),           # bn shift
            ],
            out_specs=pl.BlockSpec((1, c, n_tile), xmap),
            scratch_shapes=[
                pltpu.VMEM((n_tiles, k, n_tile), jnp.float32),  # attn logits
                pltpu.VMEM((k, 1), jnp.float32),                # running max
                pltpu.VMEM((k, 1), jnp.float32),                # running sum
            ],
        ),
        compiler_params=pltpu.CompilerParams(
            dimension_semantics=("parallel", "arbitrary", "arbitrary"),
            vmem_limit_bytes=48 * 1024 * 1024,
        ),
    )(x, w0_eff, b0_eff, w_eff, shift)

    return out.reshape(b, c, h, w)


def reference(x_nchw, params):
    """Plain-JAX reference of the PyTorch forward (eval-mode BN)."""
    b, c, h, w = x_nchw.shape
    n = h * w
    w1, b1, w0, w2, w3, gamma, beta, rmean, rvar = params
    eps = 1e-5
    idn = x_nchw.reshape(b, c, n)
    x = jnp.einsum('oc,bcn->bon', w1, idn) + b1[None, :, None]
    attn = jnp.einsum('kc,bcn->bkn', w0, x)
    attn = jax.nn.softmax(attn, axis=-1)
    attn = attn / (1e-9 + attn.sum(axis=1, keepdims=True))
    x = jnp.einsum('ck,bkn->bcn', w2, attn)
    x = jnp.einsum('oc,bcn->bon', w3, x)
    scale = gamma / jnp.sqrt(rvar + eps)
    shift = beta - rmean * scale
    x = x * scale[None, :, None] + shift[None, :, None]
    x = jnp.maximum(x + idn, 0.0)
    return x.reshape(b, c, h, w)


def make_params(key, c):
    k = c // 4
    keys = jax.random.split(key, 8)
    w1 = jax.random.normal(keys[0], (c, c), jnp.float32) * 0.1
    b1 = jax.random.normal(keys[1], (c,), jnp.float32) * 0.1
    w0 = jax.random.normal(keys[2], (k, c), jnp.float32) * 0.1
    w2 = jax.random.normal(keys[3], (c, k), jnp.float32) * 0.1
    w3 = jax.random.normal(keys[4], (c, c), jnp.float32) * 0.1
    gamma = 1.0 + 0.1 * jax.random.normal(keys[5], (c,), jnp.float32)
    beta = 0.1 * jax.random.normal(keys[6], (c,), jnp.float32)
    rmean = 0.1 * jax.random.normal(keys[7], (c,), jnp.float32)
    rvar = jnp.ones((c,), jnp.float32)
    return (w1, b1, w0, w2, w3, gamma, beta, rmean, rvar)


if __name__ == "__main__":
    B, C, H, W = 2, 16, 16, 16          # C must be divisible by 4 (K = C // 4)
    key = jax.random.PRNGKey(0)
    kx, kp = jax.random.split(key)
    x = jax.random.normal(kx, (B, C, H, W), jnp.float32)
    params = make_params(kp, C)

    ref = reference(x, params)

    # f32 compute path (exercise the multi-tile N pipeline: N=256, NT=128).
    out = external_attention(x, params, n_tile=128)
    out = jax.block_until_ready(out)
    assert out.shape == (B, C, H, W)
    assert jnp.allclose(out, ref, atol=1e-3, rtol=1e-3), "f32 mismatch vs reference"

    # bf16 MXU path (v6e/v7x-oriented): looser tolerance due to bf16 rounding.
    out_bf16 = external_attention(x, params, compute_dtype=jnp.bfloat16,
                                  n_tile=128)
    out_bf16 = jax.block_until_ready(out_bf16)
    assert jnp.allclose(out_bf16, ref, atol=3e-2, rtol=3e-2), \
        "bf16 mismatch vs reference"

    print("KERNEL_OK")
</pallas_src>

<mosaic_0001>
module attributes {stable_mosaic.version = 11 : i64} {
  func.func @ea_kernel(%arg0: i32, %arg1: i32, %arg2: i32, %arg3: memref<1x16x128xf32, #tpu.memory_space<vmem>>, %arg4: memref<4x16xf32, #tpu.memory_space<vmem>>, %arg5: memref<4x1xf32, #tpu.memory_space<vmem>>, %arg6: memref<16x4xf32, #tpu.memory_space<vmem>>, %arg7: memref<16x1xf32, #tpu.memory_space<vmem>>, %arg8: memref<1x16x128xf32, #tpu.memory_space<vmem>>, %arg9: memref<2x4x128xf32, #tpu.memory_space<vmem>>, %arg10: memref<4x1xf32, #tpu.memory_space<vmem>>, %arg11: memref<4x1xf32, #tpu.memory_space<vmem>>) attributes {dimension_semantics = [#tpu.dimension_semantics<parallel>, #tpu.dimension_semantics<arbitrary>, #tpu.dimension_semantics<arbitrary>], iteration_bounds = array<i64: 2, 2, 2>, scalar_prefetch = 0 : i64, scratch_operands = 3 : i64, tpu.core_type = #tpu.core_type<tc>, window_params = [{transform_indices = @transform_0, window_bounds = array<i64: 1, 16, 128>}, {pipeline_mode = #tpu.pipeline_mode<synchronous>, transform_indices = @transform_1, window_bounds = array<i64: 4, 16>}, {pipeline_mode = #tpu.pipeline_mode<synchronous>, transform_indices = @transform_2, window_bounds = array<i64: 4, 1>}, {pipeline_mode = #tpu.pipeline_mode<synchronous>, transform_indices = @transform_3, window_bounds = array<i64: 16, 4>}, {pipeline_mode = #tpu.pipeline_mode<synchronous>, transform_indices = @transform_4, window_bounds = array<i64: 16, 1>}, {transform_indices = @transform_5, window_bounds = array<i64: 1, 16, 128>}]} {
    %c0_i32 = arith.constant 0 : i32
    %0 = arith.cmpi eq, %arg1, %c0_i32 : i32
    %c0_i32_0 = arith.constant 0 : i32
    %1 = arith.cmpi eq, %arg2, %c0_i32_0 : i32
    %2 = arith.andi %0, %1 : i1
    %3 = arith.extui %2 : i1 to i32
    %c0_i32_1 = arith.constant 0 : i32
    %4 = arith.cmpi ne, %3, %c0_i32_1 : i32
    scf.if %4 {
      %cst = arith.constant 0xFF800000 : f32
      %11 = vector.broadcast %cst : f32 to vector<4x1xf32>
      %c0 = arith.constant 0 : index
      %c0_5 = arith.constant 0 : index
      %12 = vector.load %arg10[%c0, %c0_5] : memref<4x1xf32, #tpu.memory_space<vmem>>, vector<4x1xf32>
      tpu.vector_store %arg10[%c0, %c0_5], %11 {strides = array<i32>} : memref<4x1xf32, #tpu.memory_space<vmem>>, vector<4x1xf32>,
      %cst_6 = arith.constant 0.000000e+00 : f32
      %13 = vector.broadcast %cst_6 : f32 to vector<4x1xf32>
      %c0_7 = arith.constant 0 : index
      %c0_8 = arith.constant 0 : index
      %14 = vector.load %arg11[%c0_7, %c0_8] : memref<4x1xf32, #tpu.memory_space<vmem>>, vector<4x1xf32>
      tpu.vector_store %arg11[%c0_7, %c0_8], %13 {strides = array<i32>} : memref<4x1xf32, #tpu.memory_space<vmem>>, vector<4x1xf32>,
    } else {
    }
    %c0_i32_2 = arith.constant 0 : i32
    %5 = arith.cmpi eq, %arg1, %c0_i32_2 : i32
    %6 = arith.extui %5 : i1 to i32
    %c0_i32_3 = arith.constant 0 : i32
    %7 = arith.cmpi ne, %6, %c0_i32_3 : i32
    scf.if %7 {
      %c0 = arith.constant 0 : index
      %c0_5 = arith.constant 0 : index
      %c0_6 = arith.constant 0 : index
      %11 = vector.load %arg3[%c0, %c0_5, %c0_6] : memref<1x16x128xf32, #tpu.memory_space<vmem>>, vector<1x16x128xf32>
      %12 = vector.shape_cast %11 : vector<1x16x128xf32> to vector<16x128xf32>
      %c0_7 = arith.constant 0 : index
      %c0_8 = arith.constant 0 : index
      %13 = vector.load %arg4[%c0_7, %c0_8] : memref<4x16xf32, #tpu.memory_space<vmem>>, vector<4x16xf32>
      %cst = arith.constant dense<0.000000e+00> : vector<4x128xf32>
      %14 = tpu.matmul %13, %12, %cst {dimension_numbers = #tpu.dot_dimension_numbers<[1], [0], [0], [1], [0, 0, 1, 1], [], []>} : vector<4x16xf32>, vector<16x128xf32>, vector<4x128xf32> -> vector<4x128xf32>
      %c0_9 = arith.constant 0 : index
      %c0_10 = arith.constant 0 : index
      %15 = vector.load %arg5[%c0_9, %c0_10] : memref<4x1xf32, #tpu.memory_space<vmem>>, vector<4x1xf32>
      %16 = vector.broadcast %15 : vector<4x1xf32> to vector<4x128xf32>
      %17 = arith.addf %14, %16 : vector<4x128xf32>
      %18 = arith.index_cast %arg2 : i32 to index
      %c0_11 = arith.constant 0 : index
      %c0_12 = arith.constant 0 : index
      %19 = vector.load %arg9[%18, %c0_11, %c0_12] : memref<2x4x128xf32, #tpu.memory_space<vmem>>, vector<1x4x128xf32>
      %20 = vector.shape_cast %19 : vector<1x4x128xf32> to vector<4x128xf32>
      %21 = vector.shape_cast %17 : vector<4x128xf32> to vector<1x4x128xf32>
      tpu.vector_store %arg9[%18, %c0_11, %c0_12], %21 {strides = array<i32>} : memref<2x4x128xf32, #tpu.memory_space<vmem>>, vector<1x4x128xf32>,
      %c0_13 = arith.constant 0 : index
      %c0_14 = arith.constant 0 : index
      %22 = vector.load %arg10[%c0_13, %c0_14] : memref<4x1xf32, #tpu.memory_space<vmem>>, vector<4x1xf32>
      %cst_15 = arith.constant dense<0xFF800000> : vector<4xf32>
      %23 = vector.multi_reduction <maximumf>, %17, %cst_15 [1] : vector<4x128xf32> to vector<4xf32>
      %24 = vector.shape_cast %23 : vector<4xf32> to vector<4x1xf32>
      %25 = arith.maximumf %22, %24 : vector<4x1xf32>
      %c0_16 = arith.constant 0 : index
      %c0_17 = arith.constant 0 : index
      %26 = vector.load %arg11[%c0_16, %c0_17] : memref<4x1xf32, #tpu.memory_space<vmem>>, vector<4x1xf32>
      %27 = arith.subf %22, %25 : vector<4x1xf32>
      %28 = math.exp %27 : vector<4x1xf32>
      %29 = arith.mulf %26, %28 : vector<4x1xf32>
      %30 = vector.broadcast %25 : vector<4x1xf32> to vector<4x128xf32>
      %31 = arith.subf %17, %30 : vector<4x128xf32>
      %32 = math.exp %31 : vector<4x128xf32>
      %cst_18 = arith.constant dense<0.000000e+00> : vector<4xf32>
      %33 = vector.multi_reduction <add>, %32, %cst_18 [1] : vector<4x128xf32> to vector<4xf32>
      %34 = vector.shape_cast %33 : vector<4xf32> to vector<4x1xf32>
      %35 = arith.addf %29, %34 : vector<4x1xf32>
      %c0_19 = arith.constant 0 : index
      %c0_20 = arith.constant 0 : index
      %36 = vector.load %arg11[%c0_19, %c0_20] : memref<4x1xf32, #tpu.memory_space<vmem>>, vector<4x1xf32>
      tpu.vector_store %arg11[%c0_19, %c0_20], %35 {strides = array<i32>} : memref<4x1xf32, #tpu.memory_space<vmem>>, vector<4x1xf32>,
      %c0_21 = arith.constant 0 : index
      %c0_22 = arith.constant 0 : index
      %37 = vector.load %arg10[%c0_21, %c0_22] : memref<4x1xf32, #tpu.memory_space<vmem>>, vector<4x1xf32>
      tpu.vector_store %arg10[%c0_21, %c0_22], %25 {strides = array<i32>} : memref<4x1xf32, #tpu.memory_space<vmem>>, vector<4x1xf32>,
    } else {
    }
    %c1_i32 = arith.constant 1 : i32
    %8 = arith.cmpi eq, %arg1, %c1_i32 : i32
    %9 = arith.extui %8 : i1 to i32
    %c0_i32_4 = arith.constant 0 : i32
    %10 = arith.cmpi ne, %9, %c0_i32_4 : i32
    scf.if %10 {
      %11 = arith.index_cast %arg2 : i32 to index
      %c0 = arith.constant 0 : index
      %c0_5 = arith.constant 0 : index
      %12 = vector.load %arg9[%11, %c0, %c0_5] : memref<2x4x128xf32, #tpu.memory_space<vmem>>, vector<1x4x128xf32>
      %13 = vector.shape_cast %12 : vector<1x4x128xf32> to vector<4x128xf32>
      %c0_6 = arith.constant 0 : index
      %c0_7 = arith.constant 0 : index
      %14 = vector.load %arg10[%c0_6, %c0_7] : memref<4x1xf32, #tpu.memory_space<vmem>>, vector<4x1xf32>
      %15 = vector.broadcast %14 : vector<4x1xf32> to vector<4x128xf32>
      %16 = arith.subf %13, %15 : vector<4x128xf32>
      %17 = math.exp %16 : vector<4x128xf32>
      %c0_8 = arith.constant 0 : index
      %c0_9 = arith.constant 0 : index
      %18 = vector.load %arg11[%c0_8, %c0_9] : memref<4x1xf32, #tpu.memory_space<vmem>>, vector<4x1xf32>
      %19 = tpu.reciprocal %18 {approx = true} : vector<4x1xf32> -> vector<4x1xf32>
      %20 = vector.broadcast %19 : vector<4x1xf32> to vector<4x128xf32>
      %21 = arith.mulf %17, %20 : vector<4x128xf32>
      %cst = arith.constant dense<0.000000e+00> : vector<128xf32>
      %22 = vector.multi_reduction <add>, %21, %cst [0] : vector<4x128xf32> to vector<128xf32>
      %23 = vector.shape_cast %22 : vector<128xf32> to vector<1x128xf32>
      %cst_10 = arith.constant 9.99999971E-10 : f32
      %24 = vector.broadcast %cst_10 : f32 to vector<1x128xf32>
      %25 = arith.addf %24, %23 : vector<1x128xf32>
      %26 = tpu.reciprocal %25 {approx = true} : vector<1x128xf32> -> vector<1x128xf32>
      %27 = vector.broadcast %26 : vector<1x128xf32> to vector<4x128xf32>
      %28 = arith.mulf %21, %27 : vector<4x128xf32>
      %c0_11 = arith.constant 0 : index
      %c0_12 = arith.constant 0 : index
      %29 = vector.load %arg6[%c0_11, %c0_12] : memref<16x4xf32, #tpu.memory_space<vmem>>, vector<16x4xf32>
      %cst_13 = arith.constant dense<0.000000e+00> : vector<16x128xf32>
      %30 = tpu.matmul %29, %28, %cst_13 {dimension_numbers = #tpu.dot_dimension_numbers<[1], [0], [0], [1], [0, 0, 1, 1], [], []>} : vector<16x4xf32>, vector<4x128xf32>, vector<16x128xf32> -> vector<16x128xf32>
      %c0_14 = arith.constant 0 : index
      %c0_15 = arith.constant 0 : index
      %31 = vector.load %arg7[%c0_14, %c0_15] : memref<16x1xf32, #tpu.memory_space<vmem>>, vector<16x1xf32>
      %32 = vector.broadcast %31 : vector<16x1xf32> to vector<16x128xf32>
      %33 = arith.addf %30, %32 : vector<16x128xf32>
      %c0_16 = arith.constant 0 : index
      %c0_17 = arith.constant 0 : index
      %c0_18 = arith.constant 0 : index
      %34 = vector.load %arg3[%c0_16, %c0_17, %c0_18] : memref<1x16x128xf32, #tpu.memory_space<vmem>>, vector<1x16x128xf32>
      %35 = vector.shape_cast %34 : vector<1x16x128xf32> to vector<16x128xf32>
      %36 = arith.addf %33, %35 : vector<16x128xf32>
      %cst_19 = arith.constant 0.000000e+00 : f32
      %37 = vector.broadcast %cst_19 : f32 to vector<16x128xf32>
      %38 = arith.maximumf %36, %37 : vector<16x128xf32>
      %c0_20 = arith.constant 0 : index
      %c0_21 = arith.constant 0 : index
      %c0_22 = arith.constant 0 : index
      %39 = vector.load %arg8[%c0_20, %c0_21, %c0_22] : memref<1x16x128xf32, #tpu.memory_space<vmem>>, vector<1x16x128xf32>
      %40 = vector.shape_cast %39 : vector<1x16x128xf32> to vector<16x128xf32>
      %41 = vector.shape_cast %38 : vector<16x128xf32> to vector<1x16x128xf32>
      tpu.vector_store %arg8[%c0_20, %c0_21, %c0_22], %41 {strides = array<i32>} : memref<1x16x128xf32, #tpu.memory_space<vmem>>, vector<1x16x128xf32>,
    } else {
    }
    return
  }
  func.func @transform_0(%arg0: i32, %arg1: i32, %arg2: i32) -> (i32, i32, i32) {
    %c0_i32 = arith.constant 0 : i32
    %c0_i32_0 = arith.constant 0 : i32
    return %arg0, %c0_i32, %arg2 : i32, i32, i32
  }
  func.func @transform_1(%arg0: i32, %arg1: i32, %arg2: i32) -> (i32, i32) {
    %c0_i32 = arith.constant 0 : i32
    %c0_i32_0 = arith.constant 0 : i32
    %c0_i32_1 = arith.constant 0 : i32
    return %c0_i32, %c0_i32_0 : i32, i32
  }
  func.func @transform_2(%arg0: i32, %arg1: i32, %arg2: i32) -> (i32, i32) {
    %c0_i32 = arith.constant 0 : i32
    %c0_i32_0 = arith.constant 0 : i32
    %c0_i32_1 = arith.constant 0 : i32
    return %c0_i32, %c0_i32_0 : i32, i32
  }
  func.func @transform_3(%arg0: i32, %arg1: i32, %arg2: i32) -> (i32, i32) {
    %c0_i32 = arith.constant 0 : i32
    %c0_i32_0 = arith.constant 0 : i32
    %c0_i32_1 = arith.constant 0 : i32
    return %c0_i32, %c0_i32_0 : i32, i32
  }
  func.func @transform_4(%arg0: i32, %arg1: i32, %arg2: i32) -> (i32, i32) {
    %c0_i32 = arith.constant 0 : i32
    %c0_i32_0 = arith.constant 0 : i32
    %c0_i32_1 = arith.constant 0 : i32
    return %c0_i32, %c0_i32_0 : i32, i32
  }
  func.func @transform_5(%arg0: i32, %arg1: i32, %arg2: i32) -> (i32, i32, i32) {
    %c0_i32 = arith.constant 0 : i32
    %c0_i32_0 = arith.constant 0 : i32
    return %arg0, %c0_i32, %arg2 : i32, i32, i32
  }
}

</mosaic_0001>

<bundles_post_ra>
// kernel: tpu_custom_call.1
= control target key start
LH: loop header
LB: loop body
LE: loop exit
PB: predicated region body
PF: predicated region fallthrough
CT: control target
= control target key end

     0   :  { %s1266_s0 = inlined_call_operand.hbm [shape: f32[2,16,256], index: 0, kind: input, shape index: {}]   ;;  %s1267_s1 = inlined_call_operand.vmem [shape: f32[4,16], index: 1, kind: input, shape index: {}]   ;;  %s1268_s2 = inlined_call_operand.vmem [shape: f32[4,1], index: 2, kind: input, shape index: {}]   ;;  %s1269_s3 = inlined_call_operand.vmem [shape: f32[16,4], index: 3, kind: input, shape index: {}]   ;;  %s1270_s4 = inlined_call_operand.vmem [shape: f32[16,1], index: 4, kind: input, shape index: {}]   ;;  %s1271_s5 = inlined_call_operand.hbm [shape: f32[2,16,256], index: 5, kind: output, shape index: {}]  }
   0x1   :  { %1279 = sst [smem:[#allocation17_spill]] %s1271_s5 }
   0x2   :  { %10 = vsyncpa [#allocation6], 0 }
   0x3   :  { %12 = vsyncpa [#allocation6 + $0x1], 0 }
   0x4   :  { %13 = vsyncpa [#allocation7], 0 }
   0x5   :  { %15 = vsyncpa [#allocation7 + $0x1], 0  ;;  %s1002_s18 = smov 0   ;;  %s1004_s19 = smov 0  }
   0x6   :  { %s1006_s20 = smov 0   ;;  %s1008_s21 = smov 0  }
   0x7   :  { %s1010_s22 = smov 0   ;;  %s1012_s23 = smov 0  }
   0x8   :  { %s1014_s24 = smov 0   ;;  %s1016_s25 = smov 0  }
   0x9   :  { %s1018_s26 = smov 0   ;;  %s1020_s27 = smov 0  }
   0xa LB: > { %1280 = sst [smem:[#allocation11_spill]] %s919_s18  ;;  %s646_s28 = sadd.s32 4294967295, %s955_s27   ;;  %s955_s27 = sphi %s1020_s27, %s21_s27   ;;  %s951_s26 = sphi %s1018_s26, %s1307_s26   ;;  %s947_s25 = sphi %s1016_s25, %s1300_s25   ;;  %s943_s24 = sphi %s1014_s24, %s1306_s24   ;;  %s939_s23 = sphi %s1012_s23, %s1305_s23   ;;  %s935_s22 = sphi %s1010_s22, %s1298_s22   ;;  %s931_s21 = sphi %s1008_s21, %s1304_s21   ;;  %s927_s20 = sphi %s1006_s20, %s1303_s20   ;;  %s923_s19 = sphi %s1004_s19, %s1302_s19   ;;  %s919_s18 = sphi %s1002_s18, %s1301_s18  }
   0xb   : > { %1281 = sst [smem:[#allocation12_spill]] %s939_s23  ;;  %s647_s29 = sadd.s32 4294967294, %s955_s27  }
   0xc   : > { %1282 = sst [smem:[#allocation13_spill]] %s947_s25  ;;  %s33_s30 = sadd.s32 1, %s943_s24 }
   0xd   : > { %s36_s6 = sadd.s32 1, %s947_s25  ;;  %p34_p0 = scmp.ge.s32.totalorder %s33_s30, 2 }
   0xe   : > { %s40_s7 = sadd.s32 1, %s951_s26  ;;  %s49_s8 = sadd.s32 1, %s927_s20 }
   0xf   : > { %p56_p1 = scmp.ne.s32.totalorder %s927_s20, %s923_s19  ;;  %s1309_s30 = smov (%p34_p0, %s33_s30), 0 }
  0x10   : > { %1283 = sst [smem:[#allocation14_spill]] %s1309_s30  ;;  %s1311_s6 = smov (!%p34_p0, %s36_s6), %s947_s25 }
  0x11   : > { %s45_s9 = ssub.s32 %s943_s24, %s1309_s30  ;;  %p57_p2 = scmp.eq.s32.totalorder %s955_s27, 0 }
  0x12   : > { %p38_p3 = scmp.ge.s32.totalorder %s1311_s6, 2  ;;  %p62_p4 = scmp.ne.s32.totalorder %s923_s19, %s919_s18 }
  0x13   : > { %p1071_p5 = por %p57_p2, %p56_p1  ;;  %p63_p6 = scmp.eq.s32.totalorder %s646_s28, 0 }
  0x14   : > { %s1313_s6 = smov (%p38_p3, %s1311_s6), 0  ;;  %s1315_s7 = smov (!%p38_p3, %s40_s7), %s951_s26 }
  0x15   : > { %1285 = sst [smem:[#allocation15_spill]] %s1313_s6  ;;  %p1078_p7 = por %p63_p6, %p62_p4 }
  0x16   : > { %p172_p8 = scmp.eq.s32.totalorder %s646_s28, 7  ;;  %p42_p9 = scmp.ge.s32.totalorder %s1315_s7, 2 }
  0x17   : > { %p178_p10 = scmp.eq.s32.totalorder %s647_s29, 7  ;;  %p702_p13 = scmp.lt.s32.totalorder %s955_s27, 8 }
  0x18   : > { %p1085_p11 = por %p172_p8, %p56_p1  ;;  %s1317_s7 = smov (%p42_p9, %s1315_s7), 0 }
  0x19   : > { %p1091_p12 = por %p178_p10, %p62_p4  ;;  %s44_s14 = ssub.s32 %s951_s26, %s1317_s7 }
  0x1a   : > { %s1287_s12 = scalar_select %p1085_p11, 1, 0 }
  0x1b   : > { %s1289_s13 = scalar_select %p1091_p12, 1, 0 }
  0x1c   : > { %1288 = sst [smem:[#allocation16_spill]] %s1287_s12  ;;  %s210_s15 = sand.u32 1, %s927_s20  }
  0x1d   : > { %s46_s16 = sor.u32 %s45_s9, %s44_s14  ;;  %s650_s17 = sshll.u32 %s210_s15, 4 }
  0x1e   : > { %p47_p0 = scmp.eq.s32.totalorder %s46_s16, 0  ;;  %s651_s28 = sshll.u32 %s951_s26, 2 }
  0x1f   : > { %s219_s6 = sadd.s32 %s943_s24, %s651_s28  ;;  %s214_s30 = scalar_lea.vmem [#allocation5], %s650_s17 }
  0x20   : > { %s1101_s29 = scalar_select %p47_p0, %s927_s20, %s49_s8  }
  0x21   : > { %s222_s25 = sshll.u32 %s214_s30, 4  ;;  %s652_s18 = sshll.u32 %s219_s6, 7  ;;  %s1104_s25 = int_to_ptr.vmem [resolvable:$true] %s222_s25 }
  0x22   : > { %s1109_s23 = scalar_lea.hbm %s1266_s0, %s652_s18  ;;  %p1115_p1 = pnand %p702_p13, %p1071_p5 }
  0x23   : > { %s1119_s30 = scalar_lea.sflag [#allocation6], %s210_s15  ;;  %s811_s6 = scalar_lea.hbm %s1109_s23, 256 }
  0x24   : > { %p812_p2 = scmp.ne.s32.totalorder %s1109_s23, %s811_s6  ;;  %p813_p3 = pneg %p1115_p1 }
  0x25   : > { %s816_s9 = scalar_lea.hbm %s1266_s0, 1024  ;;  %p817_p5 = scmp.lt.u32.totalorder %s1109_s23, %s1266_s0 }
  0x26   : > { %p814_p4 = pnand %p813_p3, %p812_p2  ;;  %p818_p8 = scmp.lt.u32.totalorder %s816_s9, %s811_s6 }
  0x27   : > { %p820_p10 = scmp.lt.u32.totalorder %s811_s6, %s1109_s23 }
  0x28   : > { %p815_p6 = pneg %p814_p4  ;;  %p819_p9 = por %p818_p8, %p817_p5 }
  0x2a   : > { %p821_p13 = por %p820_p10, %p819_p9 }
  0x2c   : > { %p822_p0 = pnand %p821_p13, %p815_p6 }
  0x2e   : > { %825 = shalt.err (!%p822_p0)
}
  0x2f   : > { %s826_s14 = scalar_lea.vmem %s1104_s25, 256  ;;  %s957_s15 = smov [#allocation5]  }
  0x30   : > { %p827_p2 = scmp.ne.s32.totalorder %s1104_s25, %s826_s14  ;;  %s831_s16 = sshll.u32 %s957_s15, 4  ;;  %s832_s16 = int_to_ptr.vmem [resolvable:$false] %s831_s16 }
  0x31   : > { %s833_s17 = scalar_lea.vmem %s832_s16, 512  ;;  %p834_p11 = scmp.lt.s32.totalorder %s1104_s25, %s832_s16 }
  0x32   : > { %p829_p4 = pnand %p827_p2, %p813_p3  ;;  %p835_p5 = scmp.lt.s32.totalorder %s833_s17, %s826_s14 }
  0x34   : > { %p830_p12 = pneg %p829_p4  ;;  %p836_p8 = por %p835_p5, %p834_p11 }
  0x36   : > { %p837_p9 = pnand %p836_p8, %p830_p12 }
  0x38   : > { %840 = shalt.err (!%p837_p9)
}
  0x39   : > { %s958_s28 = smov 256   ;;  %s959_s6 = smov 128  }
  0x3a   : > { %s960_s5 = smov 8   ;;  %p653_p3 = scmp.ge.s32.totalorder %s955_s27, 1 }
  0x3b   : > { %697 = dma.hbm_to_vmem [thread:$0]  (!%p1115_p1), %s1109_s23, 256, %s1104_s25, %s1119_s30, %s958_s28, %s959_s6, %s960_s5  }
  0x3c   : > { %p230_p6 = scmp.lt.s32.totalorder %s955_s27, 9 }
  0x3e   : > { %p231_p10 = pnand %p653_p3, %p230_p6 }
  0x3f   : > { %s1150_s18 = sand.u32 (!%p231_p10), 1, %s923_s19  }
  0x40   : > { %234 = sbr.rel (%p231_p10) target bundleno = 1168 (0x490), region = 40  ;;  %s654_s9 = sshll.u32 (!%p231_p10), %s1150_s18, 4 }
  0x41   : > { %s237_s10 = scalar_lea.sflag (!%p231_p10), [#allocation6], %s1150_s18  ;;  %s1154_s12 = scalar_lea.vmem (!%p231_p10), [#allocation5], %s654_s9 }
  0x47   : > { %910 = dma.done.wait (%p1078_p7), %s237_s10, 256  }
  0x48   : > { %912 = vsyncadd (%p1078_p7), %s237_s10, 4294967040  ;;  %p267_p11 = scmp.eq.s32.totalorder %s935_s22, 0  ;;  %p268_p12 = scmp.eq.s32.totalorder %s931_s21, 0 }
  0x49   : > { %s1162_s23 = scalar_lea.vmem [#allocation8], %s654_s9 }
  0x4a   : > { %p269_p1 = pnand %p268_p12, %p267_p11 }
  0x4b   : > { %vm273_vm0 = vcmask (!%p269_p1), 3072   ;;  %v961_v0 = vmov (!%p269_p1), -inf   ;;  %v962_v1 = vmov (!%p269_p1), 0.0  }
  0x4c   : > { %272 = sbr.rel (%p269_p1) target bundleno = 83 (0x53), region = 48  ;;  %274 = vst.msk [vmem:[#allocation3] sm:$0xf] (!%p269_p1), %vm273_vm0, %v961_v0  ;;  %275 = vst.msk [vmem:[#allocation4] sm:$0xf] (!%p269_p1), %vm273_vm0, %v962_v1 }
  0x53 PF: > { %p656_p13 = scmp.ne.s32.totalorder %s935_s22, 0 }
  0x54   : > { %v279_v2 = vld [vmem:[%s1154_s12] sm:$0xff] (!%p656_p13)  ;;  %v280_v3 = vld [vmem:[%s1154_s12 + $0x8] sm:$0xff] (!%p656_p13)  ;;  %v963_v4 = vmov (!%p656_p13), 0.0|0.0   ;;  %vm964_vm1 = vmmov (!%p656_p13), 0   ;;  %v965_v6 = vmov (!%p656_p13), 0.0   ;;  %v966_v8 = vmov (!%p656_p13), 0  }
  0x55   : > { %278 = sbr.rel (%p656_p13) target bundleno = 738 (0x2e2), region = 52  ;;  %687 = vmatprep.subr.bf16.mxu0 (!%p656_p13), %v963_v4  ;;  %v688_v5 = vpack.c.bf16 (!%p656_p13), %v280_v3, %v279_v2  ;;  %679 = vmatprep.mubr.msk.f32.mxu0 (!%p656_p13), %vm964_vm1, %v965_v6  ;;  %v282_v7 = vld [vmem:[%s1268_s2] sm:$0xf] (!%p656_p13)  ;;  %vm288_vm2 = vcmask (!%p656_p13), 130048   ;;  %s658_s14 = sshll.u32 (!%p656_p13), %s931_s21, 2  ;;  %vm366_vm3 = vcmask (!%p656_p13), 1043456  }
  0x56   : > { %797 = vset.pattern.permute.xlu0 (!%p656_p13), %v966_v8  ;;  %798 = vset.pattern.permute.xlu1 (!%p656_p13), %v966_v8  ;;  %v281_v9 = vld [vmem:[%s1267_s1] sm:$0xf] (!%p656_p13)  ;;  %s363_s15 = scalar_lea.vmem (!%p656_p13), [#allocation2], %s658_s14  ;;  %v365_v15 = vld [vmem:[#allocation3] sm:$0xf] (!%p656_p13)  ;;  %vm388_vm4 = vcmask (!%p656_p13), 3072  }
  0x57   : > { %689 = vmatpush3.bf16.msra.mxu0 (!%p656_p13), %v688_v5  ;;  %285 = vperm.xlu0 (!%p656_p13), %797, %v282_v7   ;;  %v371_v26 = vld [vmem:[#allocation4] sm:$0xf] (!%p656_p13) }
  0x5a   : > { %680 = vmatmul.mubr.msk.f32.vlgmr.msra.gmra.mrb[0].mxu0 (!%p656_p13), %vm288_vm2, %v281_v9 }
  0xd6   : > { %v286_v10 = vpop.permute.xlu0 %285 }
 0x12d   : > { %v358_v11 = vpop.f32.mrb[0].mxu0 }
 0x12e   : > { %v359_v12 = vadd.f32 %v358_v11, %v286_v10  ;;  %v681_v13 = vpop.f32.mrb[1].mxu0 }
 0x130   : > { %364 = vst [vmem:[%s363_s15] sm:$0xf] %v359_v12  ;;  %v367_v14 = vsel %vm366_vm3, %v359_v12, -inf }
 0x131   : > { %368 = vmax.xlane.f32.xlu0 %v367_v14 }
 0x1be   : > { %v369_v16 = vpop.xlane.xlu0 %368 }
 0x1bf   : > { %v370_v17 = vmax.f32 %v365_v15, %v369_v16 }
 0x1c1   : > { %v372_v18 = vsub.f32 %v365_v15, %v370_v17  ;;  %390 = vst.msk [vmem:[#allocation3] sm:$0xf] %vm388_vm4, %v370_v17  ;;  %378 = vperm.xlu1 %798, %v370_v17  }
 0x1c3   : > { %v373_v24 = vmul.f32 1.442695, %v372_v18 }
 0x240   : > { %v379_v19 = vpop.permute.xlu1 %378 }
 0x241   : > { %v381_v20 = vsub.f32 %v359_v12, %v379_v19 }
 0x243   : > { %v382_v21 = vmul.f32 1.442695, %v381_v20 }
 0x245   : > { %799 = vpow2.f32 %v382_v21 }
 0x246   : > { %801 = vpow2.f32 %v373_v24 }
 0x24f   : > { %v800_v22 = vpop.eup %799 }
 0x250   : > { %v384_v23 = vsel %vm366_vm3, %v800_v22, 0.0  ;;  %v802_v25 = vpop.eup %801 }
 0x251   : > { %385 = vadd.xlane.f32.xlu1 %v384_v23  ;;  %v375_v27 = vmul.f32 %v802_v25, %v371_v26 }
 0x2de   : > { %v386_v28 = vpop.xlane.xlu1 %385 }
 0x2df   : > { %v387_v29 = vadd.f32 %v386_v28, %v375_v27 }
 0x2e1   : > { %389 = vst.msk [vmem:[#allocation4] sm:$0xf] %vm388_vm4, %v387_v29 }
 0x2e2 PF: > { %p659_p7 = scmp.ne.s32.totalorder %s935_s22, 1 }
 0x2e3   : > { %v398_v30 = vld [vmem:[#allocation3] sm:$0xf] (!%p659_p7)  ;;  %v967_v32 = vmov (!%p659_p7), 0   ;;  %v426_v34 = vld [vmem:[%s1269_s3] sm:$0xff] (!%p659_p7)  ;;  %vm440_vm5 = vcmask (!%p659_p7), 31744   ;;  %s660_s9 = sshll.u32 (!%p659_p7), %s931_s21, 2 }
 0x2e4   : > { %394 = sbr.rel (%p659_p7) target bundleno = 1136 (0x470), region = 56  ;;  %803 = vset.pattern.permute.xlu0 (!%p659_p7), %v967_v32  ;;  %804 = vset.pattern.permute.xlu1 (!%p659_p7), %v967_v32  ;;  %v428_v35 = vld [vmem:[%s1270_s4] sm:$0xff] (!%p659_p7)  ;;  %v429_v36 = vld [vmem:[%s1270_s4 + $0x8] sm:$0xff] (!%p659_p7)  ;;  %s396_s10 = scalar_lea.vmem (!%p659_p7), [#allocation2], %s660_s9  ;;  %vm415_vm6 = vcmask (!%p659_p7), 1043456  }
 0x2e5   : > { %401 = vperm.xlu0 (!%p659_p7), %803, %v398_v30   ;;  %684 = vmatprep.mubr.msk.f32.mxu0 (!%p659_p7), %vm440_vm5, %v426_v34  ;;  %v397_v37 = vld [vmem:[%s396_s10] sm:$0xf] (!%p659_p7)  ;;  %v427_v54 = vld [vmem:[%s1269_s3 + $0x8] sm:$0xff] (!%p659_p7) }
 0x2e6   : > { %432 = vperm.xlu1 (!%p659_p7), %804, %v428_v35   ;;  %v526_v58 = vld [vmem:[%s1154_s12 + $0x8] sm:$0xff] (!%p659_p7)  ;;  %v525_v61 = vld [vmem:[%s1154_s12] sm:$0xff] (!%p659_p7) }
 0x2e8   : > { %v407_v31 = vld [vmem:[#allocation4] sm:$0xf] (!%p659_p7) }
 0x2e9   : > { %805 = vrcp.f32 (!%p659_p7), %v407_v31 }
 0x2ea   : > { %437 = vperm.xlu1 (!%p659_p7), %804, %v429_v36  }
 0x2f3   : > { %v806_v33 = vpop.eup %805 }
 0x2f4   : > { %411 = vperm.xlu0 %803, %v806_v33  }
 0x364   : > { %v402_v38 = vpop.permute.xlu0 %401 }
 0x365   : > { %v404_v39 = vsub.f32 %v397_v37, %v402_v38  ;;  %v433_v55 = vpop.permute.xlu1 %432 }
 0x367   : > { %v405_v40 = vmul.f32 1.442695, %v404_v39 }
 0x369   : > { %807 = vpow2.f32 %v405_v40  ;;  %v438_v56 = vpop.permute.xlu1 %437 }
 0x373   : > { %v808_v41 = vpop.eup %807  ;;  %v412_v42 = vpop.permute.xlu0 %411 }
 0x374   : > { %v414_v43 = vmul.f32 %v808_v41, %v412_v42 }
 0x376   : > { %v416_v44 = vsel %vm415_vm6, %v414_v43, 0.0 }
 0x377   : > { %v417_v45 = vrot.slane %v416_v44, 4 }
 0x379   : > { %v418_v46 = vadd.f32 %v417_v45, %v416_v44 }
 0x37b   : > { %v419_v47 = vrot.slane %v418_v46, 2 }
 0x37d   : > { %v420_v48 = vadd.f32 %v419_v47, %v418_v46 }
 0x37f   : > { %v421_v49 = vrot.slane %v420_v48, 1 }
 0x381   : > { %v422_v50 = vadd.f32 %v421_v49, %v420_v48 }
 0x383   : > { %v423_v51 = vadd.f32 1e-09, %v422_v50 }
 0x385   : > { %809 = vrcp.f32 %v423_v51 }
 0x38f   : > { %v810_v52 = vpop.eup %809 }
 0x390   : > { %v425_v53 = vmul.f32 %v810_v52, %v414_v43 }
 0x392   : > { %682 = vmatprep.subr.msk.mxu0 %vm415_vm6, %v425_v53 }
 0x393   : > { %683 = vmatpush3.msk.msra.mxu0 %vm415_vm6, %v425_v53 }
 0x394   : > { %685 = vmatmul.mubr.msk.f32.vlgmr.msra.gmra.mrb[0].mxu0 %vm440_vm5, %v427_v54 }
 0x467   : > { %v686_v57 = vpop.f32.mrb[0].mxu0 }
 0x468   : > { %v522_v59 = vadd.f32 %v686_v57, %v438_v56  ;;  %v516_v60 = vpop.f32.mrb[1].mxu0 }
 0x469   : > { %v517_v62 = vadd.f32 %v516_v60, %v433_v55 }
 0x46a   : > { %v528_v63 = vadd.f32 %v526_v58, %v522_v59 }
 0x46b   : > { %v527_v0 = vadd.f32 %v525_v61, %v517_v62 }
 0x46c   : > { %v530_v1 = vmax.f32 %v528_v63, 0.0 }
 0x46d   : > { %v529_v2 = vmax.f32 %v527_v0, 0.0 }
 0x46e   : > { %532 = vst [vmem:[%s1162_s23 + $0x8] sm:$0xff] %v530_v1 }
 0x46f   : > { %531 = vst [vmem:[%s1162_s23] sm:$0xff] %v529_v2 }
 0x470 PF: > { %s1291_s8 = sld [smem:[#allocation12_spill]]  ;;  %s1292_s30 = sld [smem:[#allocation16_spill]] }
 0x471   : > { %s548_s16 = sshll.u32 %s1162_s23, 4  ;;  %s1293_s22 = sld [smem:[#allocation17_spill]]  ;;  %s1201_s16 = int_to_ptr.vmem [resolvable:$true] %s548_s16 }
 0x472   : > { %s534_s9 = scalar_lea.sflag [#allocation7], %s1150_s18  ;;  %s841_s10 = scalar_lea.vmem %s1201_s16, 256 }
 0x473   : > { %p842_p0 = scmp.ne.s32.totalorder %s1201_s16, %s841_s10  ;;  %s968_s25 = smov [#allocation8]  }
 0x476   : > { %s665_s14 = sshll.u32 %s1291_s8, 2  ;;  %p1295_p2 = scmp.ne.s32.totalorder %s1292_s30, 0 }
 0x477   : > { %s545_s15 = sadd.s32 %s931_s21, %s665_s14  ;;  %s1294_s6 = smov %s1293_s22 }
 0x478   : > { %s666_s17 = sshll.u32 %s545_s15, 7  ;;  %p843_p4 = pnand %p842_p0, %p1295_p2 }
 0x479   : > { %s1206_s5 = scalar_lea.hbm %s1293_s22, %s666_s17  ;;  %s845_s21 = sshll.u32 %s968_s25, 4  ;;  %s846_s21 = int_to_ptr.vmem [resolvable:$false] %s845_s21 }
 0x47a   : > { %p844_p5 = pneg %p843_p4  ;;  %s847_s23 = scalar_lea.vmem %s846_s21, 512 }
 0x47b   : > { %p848_p8 = scmp.lt.s32.totalorder %s1201_s16, %s846_s21  ;;  %p849_p9 = scmp.lt.s32.totalorder %s847_s23, %s841_s10 }
 0x47d   : > { %p850_p3 = por %p849_p9, %p848_p8 }
 0x47f   : > { %p851_p6 = pnand %p850_p3, %p844_p5 }
 0x481   : > { %854 = shalt.err (!%p851_p6)
}
 0x482   : > { %s855_s11 = scalar_lea.hbm %s1206_s5, 256  ;;  %s859_s15 = scalar_lea.hbm %s1294_s6, 1024 }
 0x483   : > { %p856_p10 = scmp.ne.s32.totalorder %s1206_s5, %s855_s11  ;;  %p860_p1 = scmp.lt.u32.totalorder %s1206_s5, %s1294_s6 }
 0x484   : > { %p861_p13 = scmp.lt.u32.totalorder %s859_s15, %s855_s11  ;;  %p863_p0 = scmp.lt.u32.totalorder %s855_s11, %s1206_s5 }
 0x485   : > { %p857_p11 = pnand %p856_p10, %p1295_p2 }
 0x486   : > { %p862_p7 = por %p861_p13, %p860_p1 }
 0x487   : > { %p858_p12 = pneg %p857_p11 }
 0x488   : > { %p864_p4 = por %p863_p0, %p862_p7 }
 0x48a   : > { %p865_p5 = pnand %p864_p4, %p858_p12 }
 0x48c   : > { %868 = shalt.err (!%p865_p5)
}
 0x48d   : > { %s969_s28 = smov 128   ;;  %s970_s22 = smov 256  }
 0x48e   : > { %s971_s10 = smov 8  }
 0x48f   : > { %692 = dma.vmem_to_hbm [thread:$0]  (%p1295_p2), %s1201_s16, 256, %s1206_s5, %s534_s9, %s969_s28, %s970_s22, %s971_s10  }
 0x490 PF: > { %s1296_s25 = sld [smem:[#allocation11_spill]]  ;;  %p703_p8 = scmp.ge.s32.totalorder %s955_s27, 2 }
 0x491   : > { %p1297_p9 = scmp.ne.s32.totalorder %s1289_s13, 0 }
 0x493   : > { %p699_p3 = pnand %p703_p8, %p1297_p9 }
 0x496   : > { %s563_s21 = sand.u32 1, %s1296_s25  }
 0x497   : > { %s564_s23 = scalar_lea.sflag [#allocation7], %s563_s21 }
 0x498   : > { %914 = dma.done.wait (!%p699_p3), %s564_s23, 256  }
 0x499   : > { %916 = vsyncadd (!%p699_p3), %s564_s23, 4294967040  ;;  %s21_s27 = sadd.s32 1, %s955_s27   ;;  %s1298_s22 = sld [smem:[#allocation13_spill]] }
 0x49a   : > { %p18_p6 = scmp.ge.s32.totalorder %s21_s27, 10   ;;  %s1299_s30 = sld [smem:[#allocation14_spill]] }
 0x49b   : > { %s1300_s25 = sld [smem:[#allocation15_spill]]  ;;  %s1301_s18 = smov %s923_s19 }
 0x49c   : > { %s1302_s19 = smov %s927_s20  ;;  %s1303_s20 = smov %s1101_s29 }
 0x49d   : > { %s1304_s21 = smov %s943_s24  ;;  %s1305_s23 = smov %s951_s26 }
 0x49e   : > { %s1307_s26 = smov %s1317_s7  ;;  %20 = sbr.rel (!%p18_p6) target bundleno = 10 (0xa), region = 99 }
 0x4a0   : > { %s1306_s24 = smov %s1299_s30 }
 0x4a5   :  { %569 = vsyncpa [#allocation6], 1 }
 0x4a6   :  { %571 = vsyncpa [#allocation6 + $0x1], 1 }
 0x4a7   :  { %572 = vsyncpa [#allocation7], 1 }
 0x4a8   :  { %574 = vsyncpa [#allocation7 + $0x1], 1 }

</bundles_post_ra>
